<compile_context>
chip_gen: v6e
topology: v6e:2x2x1
jax: 0.10.0
libtpu: 0.0.40
codegen_flags: <defaults>
</compile_context>

<pallas_src>
import jax
import jax.numpy as jnp
from jax.experimental import pallas as pl
from jax.experimental.pallas import tpu as pltpu


def _add_kernel(a_ref, b_ref, o_ref):
    o_ref[...] = a_ref[...] + b_ref[...]


_LANE = 128
_MAX_COLS = 1024   # lane-dense slab width target
_MAX_ROWS = 512    # tiled fallback: (512, <=1024) f32 block = <=2 MiB/buffer


def _choose_slab(total: int):
    """Pick a lane-dense (rows, cols, pad) factorisation of `total`."""
    if total < _LANE:
        # Tiny array: single full-extent block (full-extent dims are exempt
        # from the (8,128) divisibility rule).
        return 1, total, 0
    # Widest multiple of 128 (capped at _MAX_COLS) that divides `total`.
    for cols in range(_MAX_COLS, _LANE - 1, -_LANE):
        if total % cols == 0:
            return total // cols, cols, 0
    # Nothing divides: pad the flat tail up to a full 1024-wide row.
    cols = _MAX_COLS
    rows = -(-total // cols)
    return rows, cols, rows * cols - total


def pallas_add(x5: jax.Array, x13: jax.Array) -> jax.Array:
    assert x5.shape == x13.shape, "operands must have the same shape"
    assert x5.dtype == x13.dtype
    orig_shape = x5.shape
    total = x5.size
    rows, cols, pad = _choose_slab(total)

    a = x5.reshape(-1)
    b = x13.reshape(-1)
    if pad:
        a = jnp.pad(a, (0, pad))
        b = jnp.pad(b, (0, pad))
    a2 = a.reshape(rows, cols)
    b2 = b.reshape(rows, cols)

    # Single full-extent block when it fits the VMEM budget; otherwise a 1D
    # pipelined grid over rows (block rows multiple of 8, cols multiple of 128).
    if rows <= _MAX_ROWS:
        bm = rows
    else:
        bm = _MAX_ROWS
    grid = (pl.cdiv(rows, bm),)
    spec = pl.BlockSpec((bm, cols), lambda i: (i, 0))

    itemsize = jnp.dtype(x5.dtype).itemsize
    out = pl.pallas_call(
        _add_kernel,
        out_shape=jax.ShapeDtypeStruct((rows, cols), x5.dtype),
        grid=grid,
        in_specs=[spec, spec],
        out_specs=spec,
        compiler_params=pltpu.CompilerParams(
            dimension_semantics=("parallel",)),
        cost_estimate=pl.CostEstimate(
            flops=total,
            transcendentals=0,
            bytes_accessed=3 * total * itemsize),
    )(a2, b2)

    out_flat = out.reshape(-1)
    if pad:
        out_flat = out_flat[:total]
    return out_flat.reshape(orig_shape)


if __name__ == "__main__":
    key = jax.random.PRNGKey(0)
    k1, k2 = jax.random.split(key)

    # Module's actual NCHW activation shape (1, 72, 56, 56) — ~900 KiB/tensor.
    shape = (1, 72, 56, 56)
    x5 = jax.random.normal(k1, shape, dtype=jnp.float32)
    x13 = jax.random.normal(k2, shape, dtype=jnp.float32)

    out = pallas_add(x5, x13)
    jax.block_until_ready(out)

    ref = x5 + x13
    assert out.shape == shape
    assert jnp.allclose(out, ref, atol=1e-6, rtol=1e-6)

    print("KERNEL_OK")
</pallas_src>

<mosaic_0001>
module attributes {stable_mosaic.version = 11 : i64} {
  func.func @_add_kernel(%arg0: i32, %arg1: memref<252x896xf32, #tpu.memory_space<vmem>>, %arg2: memref<252x896xf32, #tpu.memory_space<vmem>>, %arg3: memref<252x896xf32, #tpu.memory_space<vmem>>) attributes {dimension_semantics = [#tpu.dimension_semantics<parallel>], iteration_bounds = array<i64: 1>, scalar_prefetch = 0 : i64, scratch_operands = 0 : i64, tpu.core_type = #tpu.core_type<tc>, window_params = [{transform_indices = @transform_0, window_bounds = array<i64: 252, 896>}, {transform_indices = @transform_1, window_bounds = array<i64: 252, 896>}, {transform_indices = @transform_2, window_bounds = array<i64: 252, 896>}]} {
    %c0 = arith.constant 0 : index
    %c0_0 = arith.constant 0 : index
    %0 = vector.load %arg1[%c0, %c0_0] : memref<252x896xf32, #tpu.memory_space<vmem>>, vector<252x896xf32>
    %c0_1 = arith.constant 0 : index
    %c0_2 = arith.constant 0 : index
    %1 = vector.load %arg2[%c0_1, %c0_2] : memref<252x896xf32, #tpu.memory_space<vmem>>, vector<252x896xf32>
    %2 = arith.addf %0, %1 : vector<252x896xf32>
    %c0_3 = arith.constant 0 : index
    %c0_4 = arith.constant 0 : index
    %3 = vector.load %arg3[%c0_3, %c0_4] : memref<252x896xf32, #tpu.memory_space<vmem>>, vector<252x896xf32>
    tpu.vector_store %arg3[%c0_3, %c0_4], %2 {strides = array<i32>} : memref<252x896xf32, #tpu.memory_space<vmem>>, vector<252x896xf32>,
    return
  }
  func.func @transform_0(%arg0: i32) -> (i32, i32) {
    %c0_i32 = arith.constant 0 : i32
    %c0_i32_0 = arith.constant 0 : i32
    return %arg0, %c0_i32 : i32, i32
  }
  func.func @transform_1(%arg0: i32) -> (i32, i32) {
    %c0_i32 = arith.constant 0 : i32
    %c0_i32_0 = arith.constant 0 : i32
    return %arg0, %c0_i32 : i32, i32
  }
  func.func @transform_2(%arg0: i32) -> (i32, i32) {
    %c0_i32 = arith.constant 0 : i32
    %c0_i32_0 = arith.constant 0 : i32
    return %arg0, %c0_i32 : i32, i32
  }
}

</mosaic_0001>

<bundles_post_ra>
// kernel: tpu_custom_call.1
= control target key start
LH: loop header
LB: loop body
LE: loop exit
PB: predicated region body
PF: predicated region fallthrough
CT: control target
= control target key end

     0   :  { %7 = vsyncpa [#allocation3], 0  ;;  %s1066_s0 = inlined_call_operand.hbm [shape: f32[252,896], index: 0, kind: input, shape index: {}]   ;;  %s1067_s1 = inlined_call_operand.hbm [shape: f32[252,896], index: 1, kind: input, shape index: {}]   ;;  %s1068_s2 = inlined_call_operand.hbm [shape: f32[252,896], index: 2, kind: output, shape index: {}]  }
   0x1   :  { %8 = vsyncpa [#allocation6], 0 }
   0x2   :  { %9 = vsyncpa [#allocation4], 0  ;;  %s1025_s9 = smov [#allocation2]  }
   0x3   :  { %s15_s10 = sshll.u32 %s1025_s9, 4  ;;  %s16_s10 = int_to_ptr.vmem [resolvable:$true] %s15_s10 }
   0x4   :  { %s967_s11 = scalar_lea.vmem %s16_s10, 28672  ;;  %p972_p1 = scmp.lt.s32.totalorder %s16_s10, %s16_s10 }
   0x5   :  { %p968_p0 = scmp.ne.s32.totalorder %s16_s10, %s967_s11  ;;  %p973_p2 = scmp.lt.s32.totalorder %s967_s11, %s967_s11 }
   0x7   :  { %p974_p3 = por %p973_p2, %p972_p1 }
   0x9   :  { %p975_p4 = pnand %p974_p3, %p968_p0 }
   0xb   :  { %978 = shalt.err (!%p975_p4)
}
   0xc   :  { %s1026_s12 = smov 896   ;;  %s1027_s13 = smov 56  }
   0xd   :  { %21 = dma.hbm_to_vmem [thread:$0]  %s1066_s0, 28672, %s16_s10, [#allocation3], %s1026_s12, %s1026_s12, %s1027_s13  }
   0xe   :  { %s1028_s16 = smov [#allocation5]  }
   0xf   :  { %s27_s17 = sshll.u32 %s1028_s16, 4  ;;  %s28_s17 = int_to_ptr.vmem [resolvable:$true] %s27_s17 }
  0x10   :  { %s987_s18 = scalar_lea.vmem %s28_s17, 28672  ;;  %p992_p6 = scmp.lt.s32.totalorder %s28_s17, %s28_s17 }
  0x11   :  { %p988_p5 = scmp.ne.s32.totalorder %s28_s17, %s987_s18  ;;  %p993_p7 = scmp.lt.s32.totalorder %s987_s18, %s987_s18 }
  0x13   :  { %p994_p8 = por %p993_p7, %p992_p6 }
  0x15   :  { %p995_p9 = pnand %p994_p8, %p988_p5 }
  0x17   :  { %998 = shalt.err (!%p995_p9)
}
  0x18   :  { %33 = dma.hbm_to_vmem [thread:$0]  %s1067_s1, 28672, %s28_s17, [#allocation6], %s1026_s12, %s1026_s12, %s1027_s13  }
  0x19   :  { %1019 = dma.done.wait [#allocation3], 28672  }
  0x1a   :  { %1020 = vsyncadd [#allocation3], 4294938624 }
  0x1b   :  { %1021 = dma.done.wait [#allocation6], 28672  }
  0x1c   :  { %1022 = vsyncadd [#allocation6], 4294938624  ;;  %v40_v0 = vld [vmem:[#allocation2] sm:$0xff]  ;;  %v41_v2 = vld [vmem:[#allocation2 + $0x8] sm:$0xff]  ;;  %s1029_s0 = smov [#allocation7]  }
  0x1d   :  { %v264_v1 = vld [vmem:[#allocation5] sm:$0xff]  ;;  %v265_v4 = vld [vmem:[#allocation5 + $0x8] sm:$0xff]  ;;  %v42_v5 = vld [vmem:[#allocation2 + $0x10] sm:$0xff]  ;;  %s1057_s1 = sshll.u32 %s1029_s0, 4  ;;  %s942_s1 = int_to_ptr.vmem [resolvable:$true] %s1057_s1 }
  0x1e   :  { %v488_v3 = vadd.f32 %v264_v1, %v40_v0  ;;  %v266_v6 = vld [vmem:[#allocation5 + $0x10] sm:$0xff]  ;;  %v489_v7 = vadd.f32 %v265_v4, %v41_v2  ;;  %v43_v9 = vld [vmem:[#allocation2 + $0x18] sm:$0xff]  ;;  %v44_v11 = vld [vmem:[#allocation2 + $0x20] sm:$0xff]  ;;  %s999_s21 = scalar_lea.vmem %s942_s1, 28672  ;;  %p1004_p11 = scmp.lt.s32.totalorder %s942_s1, %s942_s1 }
  0x1f   :  { %v490_v8 = vadd.f32 %v266_v6, %v42_v5  ;;  %v267_v10 = vld [vmem:[#allocation5 + $0x18] sm:$0xff]  ;;  %v268_v13 = vld [vmem:[#allocation5 + $0x20] sm:$0xff]  ;;  %v45_v14 = vld [vmem:[#allocation2 + $0x28] sm:$0xff]  ;;  %p1000_p10 = scmp.ne.s32.totalorder %s942_s1, %s999_s21  ;;  %p1005_p12 = scmp.lt.s32.totalorder %s999_s21, %s999_s21 }
  0x20   :  { %712 = vst [vmem:[#allocation7] sm:$0xff] %v488_v3  ;;  %v491_v12 = vadd.f32 %v267_v10, %v43_v9  ;;  %v269_v15 = vld [vmem:[#allocation5 + $0x28] sm:$0xff]  ;;  %713 = vst [vmem:[#allocation7 + $0x8] sm:$0xff] %v489_v7  ;;  %v492_v16 = vadd.f32 %v268_v13, %v44_v11  ;;  %v46_v18 = vld [vmem:[#allocation2 + $0x30] sm:$0xff] }
  0x21   :  { %714 = vst [vmem:[#allocation7 + $0x10] sm:$0xff] %v490_v8  ;;  %v493_v17 = vadd.f32 %v269_v15, %v45_v14  ;;  %v270_v19 = vld [vmem:[#allocation5 + $0x30] sm:$0xff]  ;;  %v47_v20 = vld [vmem:[#allocation2 + $0x38] sm:$0xff]  ;;  %v48_v23 = vld [vmem:[#allocation2 + $0x40] sm:$0xff]  ;;  %p1006_p13 = por %p1005_p12, %p1004_p11 }
  0x22   :  { %715 = vst [vmem:[#allocation7 + $0x18] sm:$0xff] %v491_v12  ;;  %v494_v21 = vadd.f32 %v270_v19, %v46_v18  ;;  %v271_v22 = vld [vmem:[#allocation5 + $0x38] sm:$0xff]  ;;  %v272_v24 = vld [vmem:[#allocation5 + $0x40] sm:$0xff]  ;;  %716 = vst [vmem:[#allocation7 + $0x20] sm:$0xff] %v492_v16 }
  0x23   :  { %717 = vst [vmem:[#allocation7 + $0x28] sm:$0xff] %v493_v17  ;;  %v495_v25 = vadd.f32 %v271_v22, %v47_v20  ;;  %v496_v26 = vadd.f32 %v272_v24, %v48_v23  ;;  %v49_v27 = vld [vmem:[#allocation2 + $0x48] sm:$0xff]  ;;  %v50_v29 = vld [vmem:[#allocation2 + $0x50] sm:$0xff]  ;;  %v51_v32 = vld [vmem:[#allocation2 + $0x58] sm:$0xff]  ;;  %p1007_p0 = pnand %p1006_p13, %p1000_p10 }
  0x24   :  { %v273_v28 = vld [vmem:[#allocation5 + $0x48] sm:$0xff]  ;;  %718 = vst [vmem:[#allocation7 + $0x30] sm:$0xff] %v494_v21  ;;  %v274_v31 = vld [vmem:[#allocation5 + $0x50] sm:$0xff]  ;;  %v275_v33 = vld [vmem:[#allocation5 + $0x58] sm:$0xff] }
  0x25   :  { %v497_v30 = vadd.f32 %v273_v28, %v49_v27  ;;  %719 = vst [vmem:[#allocation7 + $0x38] sm:$0xff] %v495_v25  ;;  %720 = vst [vmem:[#allocation7 + $0x40] sm:$0xff] %v496_v26  ;;  %v498_v34 = vadd.f32 %v274_v31, %v50_v29  ;;  %v499_v35 = vadd.f32 %v275_v33, %v51_v32  ;;  %v52_v36 = vld [vmem:[#allocation2 + $0x60] sm:$0xff]  ;;  %v53_v38 = vld [vmem:[#allocation2 + $0x68] sm:$0xff] }
  0x26   :  { %v276_v37 = vld [vmem:[#allocation5 + $0x60] sm:$0xff]  ;;  %v277_v40 = vld [vmem:[#allocation5 + $0x68] sm:$0xff]  ;;  %v54_v41 = vld [vmem:[#allocation2 + $0x70] sm:$0xff] }
  0x27   :  { %721 = vst [vmem:[#allocation7 + $0x48] sm:$0xff] %v497_v30  ;;  %v500_v39 = vadd.f32 %v276_v37, %v52_v36  ;;  %v278_v42 = vld [vmem:[#allocation5 + $0x70] sm:$0xff]  ;;  %722 = vst [vmem:[#allocation7 + $0x50] sm:$0xff] %v498_v34  ;;  %v501_v43 = vadd.f32 %v277_v40, %v53_v38  ;;  %v55_v45 = vld [vmem:[#allocation2 + $0x78] sm:$0xff] }
  0x28   :  { %723 = vst [vmem:[#allocation7 + $0x58] sm:$0xff] %v499_v35  ;;  %v502_v44 = vadd.f32 %v278_v42, %v54_v41  ;;  %v279_v46 = vld [vmem:[#allocation5 + $0x78] sm:$0xff]  ;;  %v56_v47 = vld [vmem:[#allocation2 + $0x80] sm:$0xff]  ;;  %v57_v50 = vld [vmem:[#allocation2 + $0x88] sm:$0xff] }
  0x29   :  { %724 = vst [vmem:[#allocation7 + $0x60] sm:$0xff] %v500_v39  ;;  %v503_v48 = vadd.f32 %v279_v46, %v55_v45  ;;  %v280_v49 = vld [vmem:[#allocation5 + $0x80] sm:$0xff]  ;;  %v281_v51 = vld [vmem:[#allocation5 + $0x88] sm:$0xff]  ;;  %725 = vst [vmem:[#allocation7 + $0x68] sm:$0xff] %v501_v43 }
  0x2a   :  { %726 = vst [vmem:[#allocation7 + $0x70] sm:$0xff] %v502_v44  ;;  %v504_v52 = vadd.f32 %v280_v49, %v56_v47  ;;  %v505_v53 = vadd.f32 %v281_v51, %v57_v50  ;;  %v58_v54 = vld [vmem:[#allocation2 + $0x90] sm:$0xff]  ;;  %v59_v56 = vld [vmem:[#allocation2 + $0x98] sm:$0xff]  ;;  %v60_v59 = vld [vmem:[#allocation2 + $0xa0] sm:$0xff] }
  0x2b   :  { %v282_v55 = vld [vmem:[#allocation5 + $0x90] sm:$0xff]  ;;  %727 = vst [vmem:[#allocation7 + $0x78] sm:$0xff] %v503_v48  ;;  %v283_v58 = vld [vmem:[#allocation5 + $0x98] sm:$0xff]  ;;  %v284_v60 = vld [vmem:[#allocation5 + $0xa0] sm:$0xff] }
  0x2c   :  { %v506_v57 = vadd.f32 %v282_v55, %v58_v54  ;;  %728 = vst [vmem:[#allocation7 + $0x80] sm:$0xff] %v504_v52  ;;  %729 = vst [vmem:[#allocation7 + $0x88] sm:$0xff] %v505_v53  ;;  %v507_v61 = vadd.f32 %v283_v58, %v59_v56  ;;  %v508_v62 = vadd.f32 %v284_v60, %v60_v59  ;;  %v61_v63 = vld [vmem:[#allocation2 + $0xa8] sm:$0xff]  ;;  %v62_v1 = vld [vmem:[#allocation2 + $0xb0] sm:$0xff] }
  0x2d   :  { %v285_v0 = vld [vmem:[#allocation5 + $0xa8] sm:$0xff]  ;;  %v286_v3 = vld [vmem:[#allocation5 + $0xb0] sm:$0xff]  ;;  %v63_v4 = vld [vmem:[#allocation2 + $0xb8] sm:$0xff] }
  0x2e   :  { %730 = vst [vmem:[#allocation7 + $0x90] sm:$0xff] %v506_v57  ;;  %v509_v2 = vadd.f32 %v285_v0, %v61_v63  ;;  %v287_v5 = vld [vmem:[#allocation5 + $0xb8] sm:$0xff]  ;;  %731 = vst [vmem:[#allocation7 + $0x98] sm:$0xff] %v507_v61  ;;  %v510_v6 = vadd.f32 %v286_v3, %v62_v1  ;;  %v64_v8 = vld [vmem:[#allocation2 + $0xc0] sm:$0xff] }
  0x2f   :  { %732 = vst [vmem:[#allocation7 + $0xa0] sm:$0xff] %v508_v62  ;;  %v511_v7 = vadd.f32 %v287_v5, %v63_v4  ;;  %v288_v9 = vld [vmem:[#allocation5 + $0xc0] sm:$0xff]  ;;  %v65_v10 = vld [vmem:[#allocation2 + $0xc8] sm:$0xff]  ;;  %v66_v13 = vld [vmem:[#allocation2 + $0xd0] sm:$0xff] }
  0x30   :  { %733 = vst [vmem:[#allocation7 + $0xa8] sm:$0xff] %v509_v2  ;;  %v512_v11 = vadd.f32 %v288_v9, %v64_v8  ;;  %v289_v12 = vld [vmem:[#allocation5 + $0xc8] sm:$0xff]  ;;  %v290_v14 = vld [vmem:[#allocation5 + $0xd0] sm:$0xff]  ;;  %734 = vst [vmem:[#allocation7 + $0xb0] sm:$0xff] %v510_v6 }
  0x31   :  { %735 = vst [vmem:[#allocation7 + $0xb8] sm:$0xff] %v511_v7  ;;  %v513_v15 = vadd.f32 %v289_v12, %v65_v10  ;;  %v514_v16 = vadd.f32 %v290_v14, %v66_v13  ;;  %v67_v17 = vld [vmem:[#allocation2 + $0xd8] sm:$0xff]  ;;  %v68_v19 = vld [vmem:[#allocation2 + $0xe0] sm:$0xff]  ;;  %v69_v22 = vld [vmem:[#allocation2 + $0xe8] sm:$0xff] }
  0x32   :  { %v291_v18 = vld [vmem:[#allocation5 + $0xd8] sm:$0xff]  ;;  %736 = vst [vmem:[#allocation7 + $0xc0] sm:$0xff] %v512_v11  ;;  %v292_v21 = vld [vmem:[#allocation5 + $0xe0] sm:$0xff]  ;;  %v293_v23 = vld [vmem:[#allocation5 + $0xe8] sm:$0xff] }
  0x33   :  { %v515_v20 = vadd.f32 %v291_v18, %v67_v17  ;;  %737 = vst [vmem:[#allocation7 + $0xc8] sm:$0xff] %v513_v15  ;;  %738 = vst [vmem:[#allocation7 + $0xd0] sm:$0xff] %v514_v16  ;;  %v516_v24 = vadd.f32 %v292_v21, %v68_v19  ;;  %v517_v25 = vadd.f32 %v293_v23, %v69_v22  ;;  %v70_v26 = vld [vmem:[#allocation2 + $0xf0] sm:$0xff]  ;;  %v71_v28 = vld [vmem:[#allocation2 + $0xf8] sm:$0xff] }
  0x34   :  { %v294_v27 = vld [vmem:[#allocation5 + $0xf0] sm:$0xff]  ;;  %v295_v30 = vld [vmem:[#allocation5 + $0xf8] sm:$0xff]  ;;  %v72_v31 = vld [vmem:[#allocation2 + $0x100] sm:$0xff] }
  0x35   :  { %739 = vst [vmem:[#allocation7 + $0xd8] sm:$0xff] %v515_v20  ;;  %v518_v29 = vadd.f32 %v294_v27, %v70_v26  ;;  %v296_v32 = vld [vmem:[#allocation5 + $0x100] sm:$0xff]  ;;  %740 = vst [vmem:[#allocation7 + $0xe0] sm:$0xff] %v516_v24  ;;  %v519_v33 = vadd.f32 %v295_v30, %v71_v28  ;;  %v73_v35 = vld [vmem:[#allocation2 + $0x108] sm:$0xff] }
  0x36   :  { %741 = vst [vmem:[#allocation7 + $0xe8] sm:$0xff] %v517_v25  ;;  %v520_v34 = vadd.f32 %v296_v32, %v72_v31  ;;  %v297_v36 = vld [vmem:[#allocation5 + $0x108] sm:$0xff]  ;;  %v74_v37 = vld [vmem:[#allocation2 + $0x110] sm:$0xff]  ;;  %v75_v40 = vld [vmem:[#allocation2 + $0x118] sm:$0xff] }
  0x37   :  { %742 = vst [vmem:[#allocation7 + $0xf0] sm:$0xff] %v518_v29  ;;  %v521_v38 = vadd.f32 %v297_v36, %v73_v35  ;;  %v298_v39 = vld [vmem:[#allocation5 + $0x110] sm:$0xff]  ;;  %v299_v41 = vld [vmem:[#allocation5 + $0x118] sm:$0xff]  ;;  %743 = vst [vmem:[#allocation7 + $0xf8] sm:$0xff] %v519_v33 }
  0x38   :  { %744 = vst [vmem:[#allocation7 + $0x100] sm:$0xff] %v520_v34  ;;  %v522_v42 = vadd.f32 %v298_v39, %v74_v37  ;;  %v523_v43 = vadd.f32 %v299_v41, %v75_v40  ;;  %v76_v44 = vld [vmem:[#allocation2 + $0x120] sm:$0xff]  ;;  %v77_v46 = vld [vmem:[#allocation2 + $0x128] sm:$0xff]  ;;  %v78_v49 = vld [vmem:[#allocation2 + $0x130] sm:$0xff] }
  0x39   :  { %v300_v45 = vld [vmem:[#allocation5 + $0x120] sm:$0xff]  ;;  %745 = vst [vmem:[#allocation7 + $0x108] sm:$0xff] %v521_v38  ;;  %v301_v48 = vld [vmem:[#allocation5 + $0x128] sm:$0xff]  ;;  %v302_v50 = vld [vmem:[#allocation5 + $0x130] sm:$0xff] }
  0x3a   :  { %v524_v47 = vadd.f32 %v300_v45, %v76_v44  ;;  %746 = vst [vmem:[#allocation7 + $0x110] sm:$0xff] %v522_v42  ;;  %747 = vst [vmem:[#allocation7 + $0x118] sm:$0xff] %v523_v43  ;;  %v525_v51 = vadd.f32 %v301_v48, %v77_v46  ;;  %v526_v52 = vadd.f32 %v302_v50, %v78_v49  ;;  %v79_v53 = vld [vmem:[#allocation2 + $0x138] sm:$0xff]  ;;  %v80_v55 = vld [vmem:[#allocation2 + $0x140] sm:$0xff] }
  0x3b   :  { %v303_v54 = vld [vmem:[#allocation5 + $0x138] sm:$0xff]  ;;  %v304_v57 = vld [vmem:[#allocation5 + $0x140] sm:$0xff]  ;;  %v81_v58 = vld [vmem:[#allocation2 + $0x148] sm:$0xff] }
  0x3c   :  { %748 = vst [vmem:[#allocation7 + $0x120] sm:$0xff] %v524_v47  ;;  %v527_v56 = vadd.f32 %v303_v54, %v79_v53  ;;  %v305_v59 = vld [vmem:[#allocation5 + $0x148] sm:$0xff]  ;;  %749 = vst [vmem:[#allocation7 + $0x128] sm:$0xff] %v525_v51  ;;  %v528_v60 = vadd.f32 %v304_v57, %v80_v55  ;;  %v82_v62 = vld [vmem:[#allocation2 + $0x150] sm:$0xff] }
  0x3d   :  { %750 = vst [vmem:[#allocation7 + $0x130] sm:$0xff] %v526_v52  ;;  %v529_v61 = vadd.f32 %v305_v59, %v81_v58  ;;  %v306_v63 = vld [vmem:[#allocation5 + $0x150] sm:$0xff]  ;;  %v83_v0 = vld [vmem:[#allocation2 + $0x158] sm:$0xff]  ;;  %v84_v3 = vld [vmem:[#allocation2 + $0x160] sm:$0xff] }
  0x3e   :  { %751 = vst [vmem:[#allocation7 + $0x138] sm:$0xff] %v527_v56  ;;  %v530_v1 = vadd.f32 %v306_v63, %v82_v62  ;;  %v307_v2 = vld [vmem:[#allocation5 + $0x158] sm:$0xff]  ;;  %v308_v4 = vld [vmem:[#allocation5 + $0x160] sm:$0xff]  ;;  %752 = vst [vmem:[#allocation7 + $0x140] sm:$0xff] %v528_v60 }
  0x3f   :  { %753 = vst [vmem:[#allocation7 + $0x148] sm:$0xff] %v529_v61  ;;  %v531_v5 = vadd.f32 %v307_v2, %v83_v0  ;;  %v532_v6 = vadd.f32 %v308_v4, %v84_v3  ;;  %v85_v7 = vld [vmem:[#allocation2 + $0x168] sm:$0xff]  ;;  %v86_v9 = vld [vmem:[#allocation2 + $0x170] sm:$0xff]  ;;  %v87_v12 = vld [vmem:[#allocation2 + $0x178] sm:$0xff] }
  0x40   :  { %v309_v8 = vld [vmem:[#allocation5 + $0x168] sm:$0xff]  ;;  %754 = vst [vmem:[#allocation7 + $0x150] sm:$0xff] %v530_v1  ;;  %v310_v11 = vld [vmem:[#allocation5 + $0x170] sm:$0xff]  ;;  %v311_v13 = vld [vmem:[#allocation5 + $0x178] sm:$0xff] }
  0x41   :  { %v533_v10 = vadd.f32 %v309_v8, %v85_v7  ;;  %755 = vst [vmem:[#allocation7 + $0x158] sm:$0xff] %v531_v5  ;;  %756 = vst [vmem:[#allocation7 + $0x160] sm:$0xff] %v532_v6  ;;  %v534_v14 = vadd.f32 %v310_v11, %v86_v9  ;;  %v535_v15 = vadd.f32 %v311_v13, %v87_v12  ;;  %v88_v16 = vld [vmem:[#allocation2 + $0x180] sm:$0xff]  ;;  %v89_v18 = vld [vmem:[#allocation2 + $0x188] sm:$0xff] }
  0x42   :  { %v312_v17 = vld [vmem:[#allocation5 + $0x180] sm:$0xff]  ;;  %v313_v20 = vld [vmem:[#allocation5 + $0x188] sm:$0xff]  ;;  %v90_v21 = vld [vmem:[#allocation2 + $0x190] sm:$0xff] }
  0x43   :  { %757 = vst [vmem:[#allocation7 + $0x168] sm:$0xff] %v533_v10  ;;  %v536_v19 = vadd.f32 %v312_v17, %v88_v16  ;;  %v314_v22 = vld [vmem:[#allocation5 + $0x190] sm:$0xff]  ;;  %758 = vst [vmem:[#allocation7 + $0x170] sm:$0xff] %v534_v14  ;;  %v537_v23 = vadd.f32 %v313_v20, %v89_v18  ;;  %v91_v25 = vld [vmem:[#allocation2 + $0x198] sm:$0xff] }
  0x44   :  { %759 = vst [vmem:[#allocation7 + $0x178] sm:$0xff] %v535_v15  ;;  %v538_v24 = vadd.f32 %v314_v22, %v90_v21  ;;  %v315_v26 = vld [vmem:[#allocation5 + $0x198] sm:$0xff]  ;;  %v92_v27 = vld [vmem:[#allocation2 + $0x1a0] sm:$0xff]  ;;  %v93_v30 = vld [vmem:[#allocation2 + $0x1a8] sm:$0xff] }
  0x45   :  { %760 = vst [vmem:[#allocation7 + $0x180] sm:$0xff] %v536_v19  ;;  %v539_v28 = vadd.f32 %v315_v26, %v91_v25  ;;  %v316_v29 = vld [vmem:[#allocation5 + $0x1a0] sm:$0xff]  ;;  %v317_v31 = vld [vmem:[#allocation5 + $0x1a8] sm:$0xff]  ;;  %761 = vst [vmem:[#allocation7 + $0x188] sm:$0xff] %v537_v23 }
  0x46   :  { %762 = vst [vmem:[#allocation7 + $0x190] sm:$0xff] %v538_v24  ;;  %v540_v32 = vadd.f32 %v316_v29, %v92_v27  ;;  %v541_v33 = vadd.f32 %v317_v31, %v93_v30  ;;  %v94_v34 = vld [vmem:[#allocation2 + $0x1b0] sm:$0xff]  ;;  %v95_v36 = vld [vmem:[#allocation2 + $0x1b8] sm:$0xff]  ;;  %v96_v39 = vld [vmem:[#allocation2 + $0x1c0] sm:$0xff] }
  0x47   :  { %v318_v35 = vld [vmem:[#allocation5 + $0x1b0] sm:$0xff]  ;;  %763 = vst [vmem:[#allocation7 + $0x198] sm:$0xff] %v539_v28  ;;  %v319_v38 = vld [vmem:[#allocation5 + $0x1b8] sm:$0xff]  ;;  %v320_v40 = vld [vmem:[#allocation5 + $0x1c0] sm:$0xff] }
  0x48   :  { %v542_v37 = vadd.f32 %v318_v35, %v94_v34  ;;  %764 = vst [vmem:[#allocation7 + $0x1a0] sm:$0xff] %v540_v32  ;;  %765 = vst [vmem:[#allocation7 + $0x1a8] sm:$0xff] %v541_v33  ;;  %v543_v41 = vadd.f32 %v319_v38, %v95_v36  ;;  %v544_v42 = vadd.f32 %v320_v40, %v96_v39  ;;  %v97_v43 = vld [vmem:[#allocation2 + $0x1c8] sm:$0xff]  ;;  %v98_v45 = vld [vmem:[#allocation2 + $0x1d0] sm:$0xff] }
  0x49   :  { %v321_v44 = vld [vmem:[#allocation5 + $0x1c8] sm:$0xff]  ;;  %v322_v47 = vld [vmem:[#allocation5 + $0x1d0] sm:$0xff]  ;;  %v99_v48 = vld [vmem:[#allocation2 + $0x1d8] sm:$0xff] }
  0x4a   :  { %766 = vst [vmem:[#allocation7 + $0x1b0] sm:$0xff] %v542_v37  ;;  %v545_v46 = vadd.f32 %v321_v44, %v97_v43  ;;  %v323_v49 = vld [vmem:[#allocation5 + $0x1d8] sm:$0xff]  ;;  %767 = vst [vmem:[#allocation7 + $0x1b8] sm:$0xff] %v543_v41  ;;  %v546_v50 = vadd.f32 %v322_v47, %v98_v45  ;;  %v100_v52 = vld [vmem:[#allocation2 + $0x1e0] sm:$0xff] }
  0x4b   :  { %768 = vst [vmem:[#allocation7 + $0x1c0] sm:$0xff] %v544_v42  ;;  %v547_v51 = vadd.f32 %v323_v49, %v99_v48  ;;  %v324_v53 = vld [vmem:[#allocation5 + $0x1e0] sm:$0xff]  ;;  %v101_v54 = vld [vmem:[#allocation2 + $0x1e8] sm:$0xff]  ;;  %v102_v57 = vld [vmem:[#allocation2 + $0x1f0] sm:$0xff] }
  0x4c   :  { %769 = vst [vmem:[#allocation7 + $0x1c8] sm:$0xff] %v545_v46  ;;  %v548_v55 = vadd.f32 %v324_v53, %v100_v52  ;;  %v325_v56 = vld [vmem:[#allocation5 + $0x1e8] sm:$0xff]  ;;  %v326_v58 = vld [vmem:[#allocation5 + $0x1f0] sm:$0xff]  ;;  %770 = vst [vmem:[#allocation7 + $0x1d0] sm:$0xff] %v546_v50 }
  0x4d   :  { %771 = vst [vmem:[#allocation7 + $0x1d8] sm:$0xff] %v547_v51  ;;  %v549_v59 = vadd.f32 %v325_v56, %v101_v54  ;;  %v550_v60 = vadd.f32 %v326_v58, %v102_v57  ;;  %v103_v61 = vld [vmem:[#allocation2 + $0x1f8] sm:$0xff]  ;;  %v104_v63 = vld [vmem:[#allocation2 + $0x200] sm:$0xff]  ;;  %v105_v2 = vld [vmem:[#allocation2 + $0x208] sm:$0xff] }
  0x4e   :  { %v327_v62 = vld [vmem:[#allocation5 + $0x1f8] sm:$0xff]  ;;  %772 = vst [vmem:[#allocation7 + $0x1e0] sm:$0xff] %v548_v55  ;;  %v328_v1 = vld [vmem:[#allocation5 + $0x200] sm:$0xff]  ;;  %v329_v3 = vld [vmem:[#allocation5 + $0x208] sm:$0xff] }
  0x4f   :  { %v551_v0 = vadd.f32 %v327_v62, %v103_v61  ;;  %773 = vst [vmem:[#allocation7 + $0x1e8] sm:$0xff] %v549_v59  ;;  %774 = vst [vmem:[#allocation7 + $0x1f0] sm:$0xff] %v550_v60  ;;  %v552_v4 = vadd.f32 %v328_v1, %v104_v63  ;;  %v553_v5 = vadd.f32 %v329_v3, %v105_v2  ;;  %v106_v6 = vld [vmem:[#allocation2 + $0x210] sm:$0xff]  ;;  %v107_v8 = vld [vmem:[#allocation2 + $0x218] sm:$0xff] }
  0x50   :  { %v330_v7 = vld [vmem:[#allocation5 + $0x210] sm:$0xff]  ;;  %v331_v10 = vld [vmem:[#allocation5 + $0x218] sm:$0xff]  ;;  %v108_v11 = vld [vmem:[#allocation2 + $0x220] sm:$0xff] }
  0x51   :  { %775 = vst [vmem:[#allocation7 + $0x1f8] sm:$0xff] %v551_v0  ;;  %v554_v9 = vadd.f32 %v330_v7, %v106_v6  ;;  %v332_v12 = vld [vmem:[#allocation5 + $0x220] sm:$0xff]  ;;  %776 = vst [vmem:[#allocation7 + $0x200] sm:$0xff] %v552_v4  ;;  %v555_v13 = vadd.f32 %v331_v10, %v107_v8  ;;  %v109_v15 = vld [vmem:[#allocation2 + $0x228] sm:$0xff] }
  0x52   :  { %777 = vst [vmem:[#allocation7 + $0x208] sm:$0xff] %v553_v5  ;;  %v556_v14 = vadd.f32 %v332_v12, %v108_v11  ;;  %v333_v16 = vld [vmem:[#allocation5 + $0x228] sm:$0xff]  ;;  %v110_v17 = vld [vmem:[#allocation2 + $0x230] sm:$0xff]  ;;  %v111_v20 = vld [vmem:[#allocation2 + $0x238] sm:$0xff] }
  0x53   :  { %778 = vst [vmem:[#allocation7 + $0x210] sm:$0xff] %v554_v9  ;;  %v557_v18 = vadd.f32 %v333_v16, %v109_v15  ;;  %v334_v19 = vld [vmem:[#allocation5 + $0x230] sm:$0xff]  ;;  %v335_v21 = vld [vmem:[#allocation5 + $0x238] sm:$0xff]  ;;  %779 = vst [vmem:[#allocation7 + $0x218] sm:$0xff] %v555_v13 }
  0x54   :  { %780 = vst [vmem:[#allocation7 + $0x220] sm:$0xff] %v556_v14  ;;  %v558_v22 = vadd.f32 %v334_v19, %v110_v17  ;;  %v559_v23 = vadd.f32 %v335_v21, %v111_v20  ;;  %v112_v24 = vld [vmem:[#allocation2 + $0x240] sm:$0xff]  ;;  %v113_v26 = vld [vmem:[#allocation2 + $0x248] sm:$0xff]  ;;  %v114_v29 = vld [vmem:[#allocation2 + $0x250] sm:$0xff] }
  0x55   :  { %v336_v25 = vld [vmem:[#allocation5 + $0x240] sm:$0xff]  ;;  %781 = vst [vmem:[#allocation7 + $0x228] sm:$0xff] %v557_v18  ;;  %v337_v28 = vld [vmem:[#allocation5 + $0x248] sm:$0xff]  ;;  %v338_v30 = vld [vmem:[#allocation5 + $0x250] sm:$0xff] }
  0x56   :  { %v560_v27 = vadd.f32 %v336_v25, %v112_v24  ;;  %782 = vst [vmem:[#allocation7 + $0x230] sm:$0xff] %v558_v22  ;;  %783 = vst [vmem:[#allocation7 + $0x238] sm:$0xff] %v559_v23  ;;  %v561_v31 = vadd.f32 %v337_v28, %v113_v26  ;;  %v562_v32 = vadd.f32 %v338_v30, %v114_v29  ;;  %v115_v33 = vld [vmem:[#allocation2 + $0x258] sm:$0xff]  ;;  %v116_v35 = vld [vmem:[#allocation2 + $0x260] sm:$0xff] }
  0x57   :  { %v339_v34 = vld [vmem:[#allocation5 + $0x258] sm:$0xff]  ;;  %v340_v37 = vld [vmem:[#allocation5 + $0x260] sm:$0xff]  ;;  %v117_v38 = vld [vmem:[#allocation2 + $0x268] sm:$0xff] }
  0x58   :  { %784 = vst [vmem:[#allocation7 + $0x240] sm:$0xff] %v560_v27  ;;  %v563_v36 = vadd.f32 %v339_v34, %v115_v33  ;;  %v341_v39 = vld [vmem:[#allocation5 + $0x268] sm:$0xff]  ;;  %785 = vst [vmem:[#allocation7 + $0x248] sm:$0xff] %v561_v31  ;;  %v564_v40 = vadd.f32 %v340_v37, %v116_v35  ;;  %v118_v42 = vld [vmem:[#allocation2 + $0x270] sm:$0xff] }
  0x59   :  { %786 = vst [vmem:[#allocation7 + $0x250] sm:$0xff] %v562_v32  ;;  %v565_v41 = vadd.f32 %v341_v39, %v117_v38  ;;  %v342_v43 = vld [vmem:[#allocation5 + $0x270] sm:$0xff]  ;;  %v119_v44 = vld [vmem:[#allocation2 + $0x278] sm:$0xff]  ;;  %v120_v47 = vld [vmem:[#allocation2 + $0x280] sm:$0xff] }
  0x5a   :  { %787 = vst [vmem:[#allocation7 + $0x258] sm:$0xff] %v563_v36  ;;  %v566_v45 = vadd.f32 %v342_v43, %v118_v42  ;;  %v343_v46 = vld [vmem:[#allocation5 + $0x278] sm:$0xff]  ;;  %v344_v48 = vld [vmem:[#allocation5 + $0x280] sm:$0xff]  ;;  %788 = vst [vmem:[#allocation7 + $0x260] sm:$0xff] %v564_v40 }
  0x5b   :  { %789 = vst [vmem:[#allocation7 + $0x268] sm:$0xff] %v565_v41  ;;  %v567_v49 = vadd.f32 %v343_v46, %v119_v44  ;;  %v568_v50 = vadd.f32 %v344_v48, %v120_v47  ;;  %v121_v51 = vld [vmem:[#allocation2 + $0x288] sm:$0xff]  ;;  %v122_v53 = vld [vmem:[#allocation2 + $0x290] sm:$0xff]  ;;  %v123_v56 = vld [vmem:[#allocation2 + $0x298] sm:$0xff] }
  0x5c   :  { %v345_v52 = vld [vmem:[#allocation5 + $0x288] sm:$0xff]  ;;  %790 = vst [vmem:[#allocation7 + $0x270] sm:$0xff] %v566_v45  ;;  %v346_v55 = vld [vmem:[#allocation5 + $0x290] sm:$0xff]  ;;  %v347_v57 = vld [vmem:[#allocation5 + $0x298] sm:$0xff] }
  0x5d   :  { %v569_v54 = vadd.f32 %v345_v52, %v121_v51  ;;  %791 = vst [vmem:[#allocation7 + $0x278] sm:$0xff] %v567_v49  ;;  %792 = vst [vmem:[#allocation7 + $0x280] sm:$0xff] %v568_v50  ;;  %v570_v58 = vadd.f32 %v346_v55, %v122_v53  ;;  %v571_v59 = vadd.f32 %v347_v57, %v123_v56  ;;  %v124_v60 = vld [vmem:[#allocation2 + $0x2a0] sm:$0xff]  ;;  %v125_v62 = vld [vmem:[#allocation2 + $0x2a8] sm:$0xff] }
  0x5e   :  { %v348_v61 = vld [vmem:[#allocation5 + $0x2a0] sm:$0xff]  ;;  %v349_v0 = vld [vmem:[#allocation5 + $0x2a8] sm:$0xff]  ;;  %v126_v1 = vld [vmem:[#allocation2 + $0x2b0] sm:$0xff] }
  0x5f   :  { %793 = vst [vmem:[#allocation7 + $0x288] sm:$0xff] %v569_v54  ;;  %v572_v63 = vadd.f32 %v348_v61, %v124_v60  ;;  %v350_v2 = vld [vmem:[#allocation5 + $0x2b0] sm:$0xff]  ;;  %794 = vst [vmem:[#allocation7 + $0x290] sm:$0xff] %v570_v58  ;;  %v573_v3 = vadd.f32 %v349_v0, %v125_v62  ;;  %v127_v5 = vld [vmem:[#allocation2 + $0x2b8] sm:$0xff] }
  0x60   :  { %795 = vst [vmem:[#allocation7 + $0x298] sm:$0xff] %v571_v59  ;;  %v574_v4 = vadd.f32 %v350_v2, %v126_v1  ;;  %v351_v6 = vld [vmem:[#allocation5 + $0x2b8] sm:$0xff]  ;;  %v128_v7 = vld [vmem:[#allocation2 + $0x2c0] sm:$0xff]  ;;  %v129_v10 = vld [vmem:[#allocation2 + $0x2c8] sm:$0xff] }
  0x61   :  { %796 = vst [vmem:[#allocation7 + $0x2a0] sm:$0xff] %v572_v63  ;;  %v575_v8 = vadd.f32 %v351_v6, %v127_v5  ;;  %v352_v9 = vld [vmem:[#allocation5 + $0x2c0] sm:$0xff]  ;;  %v353_v11 = vld [vmem:[#allocation5 + $0x2c8] sm:$0xff]  ;;  %797 = vst [vmem:[#allocation7 + $0x2a8] sm:$0xff] %v573_v3 }
  0x62   :  { %798 = vst [vmem:[#allocation7 + $0x2b0] sm:$0xff] %v574_v4  ;;  %v576_v12 = vadd.f32 %v352_v9, %v128_v7  ;;  %v577_v13 = vadd.f32 %v353_v11, %v129_v10  ;;  %v130_v14 = vld [vmem:[#allocation2 + $0x2d0] sm:$0xff]  ;;  %v131_v16 = vld [vmem:[#allocation2 + $0x2d8] sm:$0xff]  ;;  %v132_v19 = vld [vmem:[#allocation2 + $0x2e0] sm:$0xff] }
  0x63   :  { %v354_v15 = vld [vmem:[#allocation5 + $0x2d0] sm:$0xff]  ;;  %799 = vst [vmem:[#allocation7 + $0x2b8] sm:$0xff] %v575_v8  ;;  %v355_v18 = vld [vmem:[#allocation5 + $0x2d8] sm:$0xff]  ;;  %v356_v20 = vld [vmem:[#allocation5 + $0x2e0] sm:$0xff] }
  0x64   :  { %v578_v17 = vadd.f32 %v354_v15, %v130_v14  ;;  %800 = vst [vmem:[#allocation7 + $0x2c0] sm:$0xff] %v576_v12  ;;  %801 = vst [vmem:[#allocation7 + $0x2c8] sm:$0xff] %v577_v13  ;;  %v579_v21 = vadd.f32 %v355_v18, %v131_v16  ;;  %v580_v22 = vadd.f32 %v356_v20, %v132_v19  ;;  %v133_v23 = vld [vmem:[#allocation2 + $0x2e8] sm:$0xff]  ;;  %v134_v25 = vld [vmem:[#allocation2 + $0x2f0] sm:$0xff] }
  0x65   :  { %v357_v24 = vld [vmem:[#allocation5 + $0x2e8] sm:$0xff]  ;;  %v358_v27 = vld [vmem:[#allocation5 + $0x2f0] sm:$0xff]  ;;  %v135_v28 = vld [vmem:[#allocation2 + $0x2f8] sm:$0xff] }
  0x66   :  { %802 = vst [vmem:[#allocation7 + $0x2d0] sm:$0xff] %v578_v17  ;;  %v581_v26 = vadd.f32 %v357_v24, %v133_v23  ;;  %v359_v29 = vld [vmem:[#allocation5 + $0x2f8] sm:$0xff]  ;;  %803 = vst [vmem:[#allocation7 + $0x2d8] sm:$0xff] %v579_v21  ;;  %v582_v30 = vadd.f32 %v358_v27, %v134_v25  ;;  %v136_v32 = vld [vmem:[#allocation2 + $0x300] sm:$0xff] }
  0x67   :  { %804 = vst [vmem:[#allocation7 + $0x2e0] sm:$0xff] %v580_v22  ;;  %v583_v31 = vadd.f32 %v359_v29, %v135_v28  ;;  %v360_v33 = vld [vmem:[#allocation5 + $0x300] sm:$0xff]  ;;  %v137_v34 = vld [vmem:[#allocation2 + $0x308] sm:$0xff]  ;;  %v138_v37 = vld [vmem:[#allocation2 + $0x310] sm:$0xff] }
  0x68   :  { %805 = vst [vmem:[#allocation7 + $0x2e8] sm:$0xff] %v581_v26  ;;  %v584_v35 = vadd.f32 %v360_v33, %v136_v32  ;;  %v361_v36 = vld [vmem:[#allocation5 + $0x308] sm:$0xff]  ;;  %v362_v38 = vld [vmem:[#allocation5 + $0x310] sm:$0xff]  ;;  %806 = vst [vmem:[#allocation7 + $0x2f0] sm:$0xff] %v582_v30 }
  0x69   :  { %807 = vst [vmem:[#allocation7 + $0x2f8] sm:$0xff] %v583_v31  ;;  %v585_v39 = vadd.f32 %v361_v36, %v137_v34  ;;  %v586_v40 = vadd.f32 %v362_v38, %v138_v37  ;;  %v139_v41 = vld [vmem:[#allocation2 + $0x318] sm:$0xff]  ;;  %v140_v43 = vld [vmem:[#allocation2 + $0x320] sm:$0xff]  ;;  %v141_v46 = vld [vmem:[#allocation2 + $0x328] sm:$0xff] }
  0x6a   :  { %v363_v42 = vld [vmem:[#allocation5 + $0x318] sm:$0xff]  ;;  %808 = vst [vmem:[#allocation7 + $0x300] sm:$0xff] %v584_v35  ;;  %v364_v45 = vld [vmem:[#allocation5 + $0x320] sm:$0xff]  ;;  %v365_v47 = vld [vmem:[#allocation5 + $0x328] sm:$0xff] }
  0x6b   :  { %v587_v44 = vadd.f32 %v363_v42, %v139_v41  ;;  %809 = vst [vmem:[#allocation7 + $0x308] sm:$0xff] %v585_v39  ;;  %810 = vst [vmem:[#allocation7 + $0x310] sm:$0xff] %v586_v40  ;;  %v588_v48 = vadd.f32 %v364_v45, %v140_v43  ;;  %v589_v49 = vadd.f32 %v365_v47, %v141_v46  ;;  %v142_v50 = vld [vmem:[#allocation2 + $0x330] sm:$0xff]  ;;  %v143_v52 = vld [vmem:[#allocation2 + $0x338] sm:$0xff] }
  0x6c   :  { %v366_v51 = vld [vmem:[#allocation5 + $0x330] sm:$0xff]  ;;  %v367_v54 = vld [vmem:[#allocation5 + $0x338] sm:$0xff]  ;;  %v144_v55 = vld [vmem:[#allocation2 + $0x340] sm:$0xff] }
  0x6d   :  { %811 = vst [vmem:[#allocation7 + $0x318] sm:$0xff] %v587_v44  ;;  %v590_v53 = vadd.f32 %v366_v51, %v142_v50  ;;  %v368_v56 = vld [vmem:[#allocation5 + $0x340] sm:$0xff]  ;;  %812 = vst [vmem:[#allocation7 + $0x320] sm:$0xff] %v588_v48  ;;  %v591_v57 = vadd.f32 %v367_v54, %v143_v52  ;;  %v145_v59 = vld [vmem:[#allocation2 + $0x348] sm:$0xff] }
  0x6e   :  { %813 = vst [vmem:[#allocation7 + $0x328] sm:$0xff] %v589_v49  ;;  %v592_v58 = vadd.f32 %v368_v56, %v144_v55  ;;  %v369_v60 = vld [vmem:[#allocation5 + $0x348] sm:$0xff]  ;;  %v146_v61 = vld [vmem:[#allocation2 + $0x350] sm:$0xff]  ;;  %v147_v0 = vld [vmem:[#allocation2 + $0x358] sm:$0xff] }
  0x6f   :  { %814 = vst [vmem:[#allocation7 + $0x330] sm:$0xff] %v590_v53  ;;  %v593_v62 = vadd.f32 %v369_v60, %v145_v59  ;;  %v370_v63 = vld [vmem:[#allocation5 + $0x350] sm:$0xff]  ;;  %v371_v1 = vld [vmem:[#allocation5 + $0x358] sm:$0xff]  ;;  %815 = vst [vmem:[#allocation7 + $0x338] sm:$0xff] %v591_v57 }
  0x70   :  { %816 = vst [vmem:[#allocation7 + $0x340] sm:$0xff] %v592_v58  ;;  %v594_v2 = vadd.f32 %v370_v63, %v146_v61  ;;  %v595_v3 = vadd.f32 %v371_v1, %v147_v0  ;;  %v148_v4 = vld [vmem:[#allocation2 + $0x360] sm:$0xff]  ;;  %v149_v6 = vld [vmem:[#allocation2 + $0x368] sm:$0xff]  ;;  %v150_v9 = vld [vmem:[#allocation2 + $0x370] sm:$0xff] }
  0x71   :  { %v372_v5 = vld [vmem:[#allocation5 + $0x360] sm:$0xff]  ;;  %817 = vst [vmem:[#allocation7 + $0x348] sm:$0xff] %v593_v62  ;;  %v373_v8 = vld [vmem:[#allocation5 + $0x368] sm:$0xff]  ;;  %v374_v10 = vld [vmem:[#allocation5 + $0x370] sm:$0xff] }
  0x72   :  { %v596_v7 = vadd.f32 %v372_v5, %v148_v4  ;;  %818 = vst [vmem:[#allocation7 + $0x350] sm:$0xff] %v594_v2  ;;  %819 = vst [vmem:[#allocation7 + $0x358] sm:$0xff] %v595_v3  ;;  %v597_v11 = vadd.f32 %v373_v8, %v149_v6  ;;  %v598_v12 = vadd.f32 %v374_v10, %v150_v9  ;;  %v151_v13 = vld [vmem:[#allocation2 + $0x378] sm:$0xff]  ;;  %v152_v15 = vld [vmem:[#allocation2 + $0x380] sm:$0xff] }
  0x73   :  { %v375_v14 = vld [vmem:[#allocation5 + $0x378] sm:$0xff]  ;;  %v376_v17 = vld [vmem:[#allocation5 + $0x380] sm:$0xff]  ;;  %v153_v18 = vld [vmem:[#allocation2 + $0x388] sm:$0xff] }
  0x74   :  { %820 = vst [vmem:[#allocation7 + $0x360] sm:$0xff] %v596_v7  ;;  %v599_v16 = vadd.f32 %v375_v14, %v151_v13  ;;  %v377_v19 = vld [vmem:[#allocation5 + $0x388] sm:$0xff]  ;;  %821 = vst [vmem:[#allocation7 + $0x368] sm:$0xff] %v597_v11  ;;  %v600_v20 = vadd.f32 %v376_v17, %v152_v15  ;;  %v154_v22 = vld [vmem:[#allocation2 + $0x390] sm:$0xff] }
  0x75   :  { %822 = vst [vmem:[#allocation7 + $0x370] sm:$0xff] %v598_v12  ;;  %v601_v21 = vadd.f32 %v377_v19, %v153_v18  ;;  %v378_v23 = vld [vmem:[#allocation5 + $0x390] sm:$0xff]  ;;  %v155_v24 = vld [vmem:[#allocation2 + $0x398] sm:$0xff]  ;;  %v156_v27 = vld [vmem:[#allocation2 + $0x3a0] sm:$0xff] }
  0x76   :  { %823 = vst [vmem:[#allocation7 + $0x378] sm:$0xff] %v599_v16  ;;  %v602_v25 = vadd.f32 %v378_v23, %v154_v22  ;;  %v379_v26 = vld [vmem:[#allocation5 + $0x398] sm:$0xff]  ;;  %v380_v28 = vld [vmem:[#allocation5 + $0x3a0] sm:$0xff]  ;;  %824 = vst [vmem:[#allocation7 + $0x380] sm:$0xff] %v600_v20 }
  0x77   :  { %825 = vst [vmem:[#allocation7 + $0x388] sm:$0xff] %v601_v21  ;;  %v603_v29 = vadd.f32 %v379_v26, %v155_v24  ;;  %v604_v30 = vadd.f32 %v380_v28, %v156_v27  ;;  %v157_v31 = vld [vmem:[#allocation2 + $0x3a8] sm:$0xff]  ;;  %v158_v33 = vld [vmem:[#allocation2 + $0x3b0] sm:$0xff]  ;;  %v159_v36 = vld [vmem:[#allocation2 + $0x3b8] sm:$0xff] }
  0x78   :  { %v381_v32 = vld [vmem:[#allocation5 + $0x3a8] sm:$0xff]  ;;  %826 = vst [vmem:[#allocation7 + $0x390] sm:$0xff] %v602_v25  ;;  %v382_v35 = vld [vmem:[#allocation5 + $0x3b0] sm:$0xff]  ;;  %v383_v37 = vld [vmem:[#allocation5 + $0x3b8] sm:$0xff] }
  0x79   :  { %v605_v34 = vadd.f32 %v381_v32, %v157_v31  ;;  %827 = vst [vmem:[#allocation7 + $0x398] sm:$0xff] %v603_v29  ;;  %828 = vst [vmem:[#allocation7 + $0x3a0] sm:$0xff] %v604_v30  ;;  %v606_v38 = vadd.f32 %v382_v35, %v158_v33  ;;  %v607_v39 = vadd.f32 %v383_v37, %v159_v36  ;;  %v160_v40 = vld [vmem:[#allocation2 + $0x3c0] sm:$0xff]  ;;  %v161_v42 = vld [vmem:[#allocation2 + $0x3c8] sm:$0xff] }
  0x7a   :  { %v384_v41 = vld [vmem:[#allocation5 + $0x3c0] sm:$0xff]  ;;  %v385_v44 = vld [vmem:[#allocation5 + $0x3c8] sm:$0xff]  ;;  %v162_v45 = vld [vmem:[#allocation2 + $0x3d0] sm:$0xff] }
  0x7b   :  { %829 = vst [vmem:[#allocation7 + $0x3a8] sm:$0xff] %v605_v34  ;;  %v608_v43 = vadd.f32 %v384_v41, %v160_v40  ;;  %v386_v46 = vld [vmem:[#allocation5 + $0x3d0] sm:$0xff]  ;;  %830 = vst [vmem:[#allocation7 + $0x3b0] sm:$0xff] %v606_v38  ;;  %v609_v47 = vadd.f32 %v385_v44, %v161_v42  ;;  %v163_v49 = vld [vmem:[#allocation2 + $0x3d8] sm:$0xff] }
  0x7c   :  { %831 = vst [vmem:[#allocation7 + $0x3b8] sm:$0xff] %v607_v39  ;;  %v610_v48 = vadd.f32 %v386_v46, %v162_v45  ;;  %v387_v50 = vld [vmem:[#allocation5 + $0x3d8] sm:$0xff]  ;;  %v164_v51 = vld [vmem:[#allocation2 + $0x3e0] sm:$0xff]  ;;  %v165_v54 = vld [vmem:[#allocation2 + $0x3e8] sm:$0xff] }
  0x7d   :  { %832 = vst [vmem:[#allocation7 + $0x3c0] sm:$0xff] %v608_v43  ;;  %v611_v52 = vadd.f32 %v387_v50, %v163_v49  ;;  %v388_v53 = vld [vmem:[#allocation5 + $0x3e0] sm:$0xff]  ;;  %v389_v55 = vld [vmem:[#allocation5 + $0x3e8] sm:$0xff]  ;;  %833 = vst [vmem:[#allocation7 + $0x3c8] sm:$0xff] %v609_v47 }
  0x7e   :  { %834 = vst [vmem:[#allocation7 + $0x3d0] sm:$0xff] %v610_v48  ;;  %v612_v56 = vadd.f32 %v388_v53, %v164_v51  ;;  %v613_v57 = vadd.f32 %v389_v55, %v165_v54  ;;  %v166_v58 = vld [vmem:[#allocation2 + $0x3f0] sm:$0xff]  ;;  %v167_v60 = vld [vmem:[#allocation2 + $0x3f8] sm:$0xff]  ;;  %v168_v63 = vld [vmem:[#allocation2 + $0x400] sm:$0xff] }
  0x7f   :  { %v390_v59 = vld [vmem:[#allocation5 + $0x3f0] sm:$0xff]  ;;  %835 = vst [vmem:[#allocation7 + $0x3d8] sm:$0xff] %v611_v52  ;;  %v391_v62 = vld [vmem:[#allocation5 + $0x3f8] sm:$0xff]  ;;  %v392_v0 = vld [vmem:[#allocation5 + $0x400] sm:$0xff] }
  0x80   :  { %v614_v61 = vadd.f32 %v390_v59, %v166_v58  ;;  %836 = vst [vmem:[#allocation7 + $0x3e0] sm:$0xff] %v612_v56  ;;  %837 = vst [vmem:[#allocation7 + $0x3e8] sm:$0xff] %v613_v57  ;;  %v615_v1 = vadd.f32 %v391_v62, %v167_v60  ;;  %v616_v2 = vadd.f32 %v392_v0, %v168_v63  ;;  %v169_v3 = vld [vmem:[#allocation2 + $0x408] sm:$0xff]  ;;  %v170_v5 = vld [vmem:[#allocation2 + $0x410] sm:$0xff] }
  0x81   :  { %v393_v4 = vld [vmem:[#allocation5 + $0x408] sm:$0xff]  ;;  %v394_v7 = vld [vmem:[#allocation5 + $0x410] sm:$0xff]  ;;  %v171_v8 = vld [vmem:[#allocation2 + $0x418] sm:$0xff] }
  0x82   :  { %838 = vst [vmem:[#allocation7 + $0x3f0] sm:$0xff] %v614_v61  ;;  %v617_v6 = vadd.f32 %v393_v4, %v169_v3  ;;  %v395_v9 = vld [vmem:[#allocation5 + $0x418] sm:$0xff]  ;;  %839 = vst [vmem:[#allocation7 + $0x3f8] sm:$0xff] %v615_v1  ;;  %v618_v10 = vadd.f32 %v394_v7, %v170_v5  ;;  %v172_v12 = vld [vmem:[#allocation2 + $0x420] sm:$0xff] }
  0x83   :  { %840 = vst [vmem:[#allocation7 + $0x400] sm:$0xff] %v616_v2  ;;  %v619_v11 = vadd.f32 %v395_v9, %v171_v8  ;;  %v396_v13 = vld [vmem:[#allocation5 + $0x420] sm:$0xff]  ;;  %v173_v14 = vld [vmem:[#allocation2 + $0x428] sm:$0xff]  ;;  %v174_v17 = vld [vmem:[#allocation2 + $0x430] sm:$0xff] }
  0x84   :  { %841 = vst [vmem:[#allocation7 + $0x408] sm:$0xff] %v617_v6  ;;  %v620_v15 = vadd.f32 %v396_v13, %v172_v12  ;;  %v397_v16 = vld [vmem:[#allocation5 + $0x428] sm:$0xff]  ;;  %v398_v18 = vld [vmem:[#allocation5 + $0x430] sm:$0xff]  ;;  %842 = vst [vmem:[#allocation7 + $0x410] sm:$0xff] %v618_v10 }
  0x85   :  { %843 = vst [vmem:[#allocation7 + $0x418] sm:$0xff] %v619_v11  ;;  %v621_v19 = vadd.f32 %v397_v16, %v173_v14  ;;  %v622_v20 = vadd.f32 %v398_v18, %v174_v17  ;;  %v175_v21 = vld [vmem:[#allocation2 + $0x438] sm:$0xff]  ;;  %v176_v23 = vld [vmem:[#allocation2 + $0x440] sm:$0xff]  ;;  %v177_v26 = vld [vmem:[#allocation2 + $0x448] sm:$0xff] }
  0x86   :  { %v399_v22 = vld [vmem:[#allocation5 + $0x438] sm:$0xff]  ;;  %844 = vst [vmem:[#allocation7 + $0x420] sm:$0xff] %v620_v15  ;;  %v400_v25 = vld [vmem:[#allocation5 + $0x440] sm:$0xff]  ;;  %v401_v27 = vld [vmem:[#allocation5 + $0x448] sm:$0xff] }
  0x87   :  { %v623_v24 = vadd.f32 %v399_v22, %v175_v21  ;;  %845 = vst [vmem:[#allocation7 + $0x428] sm:$0xff] %v621_v19  ;;  %846 = vst [vmem:[#allocation7 + $0x430] sm:$0xff] %v622_v20  ;;  %v624_v28 = vadd.f32 %v400_v25, %v176_v23  ;;  %v625_v29 = vadd.f32 %v401_v27, %v177_v26  ;;  %v178_v30 = vld [vmem:[#allocation2 + $0x450] sm:$0xff]  ;;  %v179_v32 = vld [vmem:[#allocation2 + $0x458] sm:$0xff] }
  0x88   :  { %v402_v31 = vld [vmem:[#allocation5 + $0x450] sm:$0xff]  ;;  %v403_v34 = vld [vmem:[#allocation5 + $0x458] sm:$0xff]  ;;  %v180_v35 = vld [vmem:[#allocation2 + $0x460] sm:$0xff] }
  0x89   :  { %847 = vst [vmem:[#allocation7 + $0x438] sm:$0xff] %v623_v24  ;;  %v626_v33 = vadd.f32 %v402_v31, %v178_v30  ;;  %v404_v36 = vld [vmem:[#allocation5 + $0x460] sm:$0xff]  ;;  %848 = vst [vmem:[#allocation7 + $0x440] sm:$0xff] %v624_v28  ;;  %v627_v37 = vadd.f32 %v403_v34, %v179_v32  ;;  %v181_v39 = vld [vmem:[#allocation2 + $0x468] sm:$0xff] }
  0x8a   :  { %849 = vst [vmem:[#allocation7 + $0x448] sm:$0xff] %v625_v29  ;;  %v628_v38 = vadd.f32 %v404_v36, %v180_v35  ;;  %v405_v40 = vld [vmem:[#allocation5 + $0x468] sm:$0xff]  ;;  %v182_v41 = vld [vmem:[#allocation2 + $0x470] sm:$0xff]  ;;  %v183_v44 = vld [vmem:[#allocation2 + $0x478] sm:$0xff] }
  0x8b   :  { %850 = vst [vmem:[#allocation7 + $0x450] sm:$0xff] %v626_v33  ;;  %v629_v42 = vadd.f32 %v405_v40, %v181_v39  ;;  %v406_v43 = vld [vmem:[#allocation5 + $0x470] sm:$0xff]  ;;  %v407_v45 = vld [vmem:[#allocation5 + $0x478] sm:$0xff]  ;;  %851 = vst [vmem:[#allocation7 + $0x458] sm:$0xff] %v627_v37 }
  0x8c   :  { %852 = vst [vmem:[#allocation7 + $0x460] sm:$0xff] %v628_v38  ;;  %v630_v46 = vadd.f32 %v406_v43, %v182_v41  ;;  %v631_v47 = vadd.f32 %v407_v45, %v183_v44  ;;  %v184_v48 = vld [vmem:[#allocation2 + $0x480] sm:$0xff]  ;;  %v185_v50 = vld [vmem:[#allocation2 + $0x488] sm:$0xff]  ;;  %v186_v53 = vld [vmem:[#allocation2 + $0x490] sm:$0xff] }
  0x8d   :  { %v408_v49 = vld [vmem:[#allocation5 + $0x480] sm:$0xff]  ;;  %853 = vst [vmem:[#allocation7 + $0x468] sm:$0xff] %v629_v42  ;;  %v409_v52 = vld [vmem:[#allocation5 + $0x488] sm:$0xff]  ;;  %v410_v54 = vld [vmem:[#allocation5 + $0x490] sm:$0xff] }
  0x8e   :  { %v632_v51 = vadd.f32 %v408_v49, %v184_v48  ;;  %854 = vst [vmem:[#allocation7 + $0x470] sm:$0xff] %v630_v46  ;;  %855 = vst [vmem:[#allocation7 + $0x478] sm:$0xff] %v631_v47  ;;  %v633_v55 = vadd.f32 %v409_v52, %v185_v50  ;;  %v634_v56 = vadd.f32 %v410_v54, %v186_v53  ;;  %v187_v57 = vld [vmem:[#allocation2 + $0x498] sm:$0xff]  ;;  %v188_v59 = vld [vmem:[#allocation2 + $0x4a0] sm:$0xff] }
  0x8f   :  { %v411_v58 = vld [vmem:[#allocation5 + $0x498] sm:$0xff]  ;;  %v412_v61 = vld [vmem:[#allocation5 + $0x4a0] sm:$0xff]  ;;  %v189_v62 = vld [vmem:[#allocation2 + $0x4a8] sm:$0xff] }
  0x90   :  { %856 = vst [vmem:[#allocation7 + $0x480] sm:$0xff] %v632_v51  ;;  %v635_v60 = vadd.f32 %v411_v58, %v187_v57  ;;  %v413_v63 = vld [vmem:[#allocation5 + $0x4a8] sm:$0xff]  ;;  %857 = vst [vmem:[#allocation7 + $0x488] sm:$0xff] %v633_v55  ;;  %v636_v0 = vadd.f32 %v412_v61, %v188_v59  ;;  %v190_v2 = vld [vmem:[#allocation2 + $0x4b0] sm:$0xff] }
  0x91   :  { %858 = vst [vmem:[#allocation7 + $0x490] sm:$0xff] %v634_v56  ;;  %v637_v1 = vadd.f32 %v413_v63, %v189_v62  ;;  %v414_v3 = vld [vmem:[#allocation5 + $0x4b0] sm:$0xff]  ;;  %v191_v4 = vld [vmem:[#allocation2 + $0x4b8] sm:$0xff]  ;;  %v192_v7 = vld [vmem:[#allocation2 + $0x4c0] sm:$0xff] }
  0x92   :  { %859 = vst [vmem:[#allocation7 + $0x498] sm:$0xff] %v635_v60  ;;  %v638_v5 = vadd.f32 %v414_v3, %v190_v2  ;;  %v415_v6 = vld [vmem:[#allocation5 + $0x4b8] sm:$0xff]  ;;  %v416_v8 = vld [vmem:[#allocation5 + $0x4c0] sm:$0xff]  ;;  %860 = vst [vmem:[#allocation7 + $0x4a0] sm:$0xff] %v636_v0 }
  0x93   :  { %861 = vst [vmem:[#allocation7 + $0x4a8] sm:$0xff] %v637_v1  ;;  %v639_v9 = vadd.f32 %v415_v6, %v191_v4  ;;  %v640_v10 = vadd.f32 %v416_v8, %v192_v7  ;;  %v193_v11 = vld [vmem:[#allocation2 + $0x4c8] sm:$0xff]  ;;  %v194_v13 = vld [vmem:[#allocation2 + $0x4d0] sm:$0xff]  ;;  %v195_v16 = vld [vmem:[#allocation2 + $0x4d8] sm:$0xff] }
  0x94   :  { %v417_v12 = vld [vmem:[#allocation5 + $0x4c8] sm:$0xff]  ;;  %862 = vst [vmem:[#allocation7 + $0x4b0] sm:$0xff] %v638_v5  ;;  %v418_v15 = vld [vmem:[#allocation5 + $0x4d0] sm:$0xff]  ;;  %v419_v17 = vld [vmem:[#allocation5 + $0x4d8] sm:$0xff] }
  0x95   :  { %v641_v14 = vadd.f32 %v417_v12, %v193_v11  ;;  %863 = vst [vmem:[#allocation7 + $0x4b8] sm:$0xff] %v639_v9  ;;  %864 = vst [vmem:[#allocation7 + $0x4c0] sm:$0xff] %v640_v10  ;;  %v642_v18 = vadd.f32 %v418_v15, %v194_v13  ;;  %v643_v19 = vadd.f32 %v419_v17, %v195_v16  ;;  %v196_v20 = vld [vmem:[#allocation2 + $0x4e0] sm:$0xff]  ;;  %v197_v22 = vld [vmem:[#allocation2 + $0x4e8] sm:$0xff] }
  0x96   :  { %v420_v21 = vld [vmem:[#allocation5 + $0x4e0] sm:$0xff]  ;;  %v421_v24 = vld [vmem:[#allocation5 + $0x4e8] sm:$0xff]  ;;  %v198_v25 = vld [vmem:[#allocation2 + $0x4f0] sm:$0xff] }
  0x97   :  { %865 = vst [vmem:[#allocation7 + $0x4c8] sm:$0xff] %v641_v14  ;;  %v644_v23 = vadd.f32 %v420_v21, %v196_v20  ;;  %v422_v26 = vld [vmem:[#allocation5 + $0x4f0] sm:$0xff]  ;;  %866 = vst [vmem:[#allocation7 + $0x4d0] sm:$0xff] %v642_v18  ;;  %v645_v27 = vadd.f32 %v421_v24, %v197_v22  ;;  %v199_v29 = vld [vmem:[#allocation2 + $0x4f8] sm:$0xff] }
  0x98   :  { %867 = vst [vmem:[#allocation7 + $0x4d8] sm:$0xff] %v643_v19  ;;  %v646_v28 = vadd.f32 %v422_v26, %v198_v25  ;;  %v423_v30 = vld [vmem:[#allocation5 + $0x4f8] sm:$0xff]  ;;  %v200_v31 = vld [vmem:[#allocation2 + $0x500] sm:$0xff]  ;;  %v201_v34 = vld [vmem:[#allocation2 + $0x508] sm:$0xff] }
  0x99   :  { %868 = vst [vmem:[#allocation7 + $0x4e0] sm:$0xff] %v644_v23  ;;  %v647_v32 = vadd.f32 %v423_v30, %v199_v29  ;;  %v424_v33 = vld [vmem:[#allocation5 + $0x500] sm:$0xff]  ;;  %v425_v35 = vld [vmem:[#allocation5 + $0x508] sm:$0xff]  ;;  %869 = vst [vmem:[#allocation7 + $0x4e8] sm:$0xff] %v645_v27 }
  0x9a   :  { %870 = vst [vmem:[#allocation7 + $0x4f0] sm:$0xff] %v646_v28  ;;  %v648_v36 = vadd.f32 %v424_v33, %v200_v31  ;;  %v649_v37 = vadd.f32 %v425_v35, %v201_v34  ;;  %v202_v38 = vld [vmem:[#allocation2 + $0x510] sm:$0xff]  ;;  %v203_v40 = vld [vmem:[#allocation2 + $0x518] sm:$0xff]  ;;  %v204_v43 = vld [vmem:[#allocation2 + $0x520] sm:$0xff] }
  0x9b   :  { %v426_v39 = vld [vmem:[#allocation5 + $0x510] sm:$0xff]  ;;  %871 = vst [vmem:[#allocation7 + $0x4f8] sm:$0xff] %v647_v32  ;;  %v427_v42 = vld [vmem:[#allocation5 + $0x518] sm:$0xff]  ;;  %v428_v44 = vld [vmem:[#allocation5 + $0x520] sm:$0xff] }
  0x9c   :  { %v650_v41 = vadd.f32 %v426_v39, %v202_v38  ;;  %872 = vst [vmem:[#allocation7 + $0x500] sm:$0xff] %v648_v36  ;;  %873 = vst [vmem:[#allocation7 + $0x508] sm:$0xff] %v649_v37  ;;  %v651_v45 = vadd.f32 %v427_v42, %v203_v40  ;;  %v652_v46 = vadd.f32 %v428_v44, %v204_v43  ;;  %v205_v47 = vld [vmem:[#allocation2 + $0x528] sm:$0xff]  ;;  %v206_v49 = vld [vmem:[#allocation2 + $0x530] sm:$0xff] }
  0x9d   :  { %v429_v48 = vld [vmem:[#allocation5 + $0x528] sm:$0xff]  ;;  %v430_v51 = vld [vmem:[#allocation5 + $0x530] sm:$0xff]  ;;  %v207_v52 = vld [vmem:[#allocation2 + $0x538] sm:$0xff] }
  0x9e   :  { %874 = vst [vmem:[#allocation7 + $0x510] sm:$0xff] %v650_v41  ;;  %v653_v50 = vadd.f32 %v429_v48, %v205_v47  ;;  %v431_v53 = vld [vmem:[#allocation5 + $0x538] sm:$0xff]  ;;  %875 = vst [vmem:[#allocation7 + $0x518] sm:$0xff] %v651_v45  ;;  %v654_v54 = vadd.f32 %v430_v51, %v206_v49  ;;  %v208_v56 = vld [vmem:[#allocation2 + $0x540] sm:$0xff] }
  0x9f   :  { %876 = vst [vmem:[#allocation7 + $0x520] sm:$0xff] %v652_v46  ;;  %v655_v55 = vadd.f32 %v431_v53, %v207_v52  ;;  %v432_v57 = vld [vmem:[#allocation5 + $0x540] sm:$0xff]  ;;  %v209_v58 = vld [vmem:[#allocation2 + $0x548] sm:$0xff]  ;;  %v210_v61 = vld [vmem:[#allocation2 + $0x550] sm:$0xff] }
  0xa0   :  { %877 = vst [vmem:[#allocation7 + $0x528] sm:$0xff] %v653_v50  ;;  %v656_v59 = vadd.f32 %v432_v57, %v208_v56  ;;  %v433_v60 = vld [vmem:[#allocation5 + $0x548] sm:$0xff]  ;;  %v434_v62 = vld [vmem:[#allocation5 + $0x550] sm:$0xff]  ;;  %878 = vst [vmem:[#allocation7 + $0x530] sm:$0xff] %v654_v54 }
  0xa1   :  { %879 = vst [vmem:[#allocation7 + $0x538] sm:$0xff] %v655_v55  ;;  %v657_v63 = vadd.f32 %v433_v60, %v209_v58  ;;  %v658_v0 = vadd.f32 %v434_v62, %v210_v61  ;;  %v211_v1 = vld [vmem:[#allocation2 + $0x558] sm:$0xff]  ;;  %v212_v3 = vld [vmem:[#allocation2 + $0x560] sm:$0xff]  ;;  %v213_v6 = vld [vmem:[#allocation2 + $0x568] sm:$0xff] }
  0xa2   :  { %v435_v2 = vld [vmem:[#allocation5 + $0x558] sm:$0xff]  ;;  %880 = vst [vmem:[#allocation7 + $0x540] sm:$0xff] %v656_v59  ;;  %v436_v5 = vld [vmem:[#allocation5 + $0x560] sm:$0xff]  ;;  %v437_v7 = vld [vmem:[#allocation5 + $0x568] sm:$0xff] }
  0xa3   :  { %v659_v4 = vadd.f32 %v435_v2, %v211_v1  ;;  %881 = vst [vmem:[#allocation7 + $0x548] sm:$0xff] %v657_v63  ;;  %882 = vst [vmem:[#allocation7 + $0x550] sm:$0xff] %v658_v0  ;;  %v660_v8 = vadd.f32 %v436_v5, %v212_v3  ;;  %v661_v9 = vadd.f32 %v437_v7, %v213_v6  ;;  %v214_v10 = vld [vmem:[#allocation2 + $0x570] sm:$0xff]  ;;  %v215_v12 = vld [vmem:[#allocation2 + $0x578] sm:$0xff] }
  0xa4   :  { %v438_v11 = vld [vmem:[#allocation5 + $0x570] sm:$0xff]  ;;  %v439_v14 = vld [vmem:[#allocation5 + $0x578] sm:$0xff]  ;;  %v216_v15 = vld [vmem:[#allocation2 + $0x580] sm:$0xff] }
  0xa5   :  { %883 = vst [vmem:[#allocation7 + $0x558] sm:$0xff] %v659_v4  ;;  %v662_v13 = vadd.f32 %v438_v11, %v214_v10  ;;  %v440_v16 = vld [vmem:[#allocation5 + $0x580] sm:$0xff]  ;;  %884 = vst [vmem:[#allocation7 + $0x560] sm:$0xff] %v660_v8  ;;  %v663_v17 = vadd.f32 %v439_v14, %v215_v12  ;;  %v217_v19 = vld [vmem:[#allocation2 + $0x588] sm:$0xff] }
  0xa6   :  { %885 = vst [vmem:[#allocation7 + $0x568] sm:$0xff] %v661_v9  ;;  %v664_v18 = vadd.f32 %v440_v16, %v216_v15  ;;  %v441_v20 = vld [vmem:[#allocation5 + $0x588] sm:$0xff]  ;;  %v218_v21 = vld [vmem:[#allocation2 + $0x590] sm:$0xff]  ;;  %v219_v24 = vld [vmem:[#allocation2 + $0x598] sm:$0xff] }
  0xa7   :  { %886 = vst [vmem:[#allocation7 + $0x570] sm:$0xff] %v662_v13  ;;  %v665_v22 = vadd.f32 %v441_v20, %v217_v19  ;;  %v442_v23 = vld [vmem:[#allocation5 + $0x590] sm:$0xff]  ;;  %v443_v25 = vld [vmem:[#allocation5 + $0x598] sm:$0xff]  ;;  %887 = vst [vmem:[#allocation7 + $0x578] sm:$0xff] %v663_v17 }
  0xa8   :  { %888 = vst [vmem:[#allocation7 + $0x580] sm:$0xff] %v664_v18  ;;  %v666_v26 = vadd.f32 %v442_v23, %v218_v21  ;;  %v667_v27 = vadd.f32 %v443_v25, %v219_v24  ;;  %v220_v28 = vld [vmem:[#allocation2 + $0x5a0] sm:$0xff]  ;;  %v221_v30 = vld [vmem:[#allocation2 + $0x5a8] sm:$0xff]  ;;  %v222_v33 = vld [vmem:[#allocation2 + $0x5b0] sm:$0xff] }
  0xa9   :  { %v444_v29 = vld [vmem:[#allocation5 + $0x5a0] sm:$0xff]  ;;  %889 = vst [vmem:[#allocation7 + $0x588] sm:$0xff] %v665_v22  ;;  %v445_v32 = vld [vmem:[#allocation5 + $0x5a8] sm:$0xff]  ;;  %v446_v34 = vld [vmem:[#allocation5 + $0x5b0] sm:$0xff] }
  0xaa   :  { %v668_v31 = vadd.f32 %v444_v29, %v220_v28  ;;  %890 = vst [vmem:[#allocation7 + $0x590] sm:$0xff] %v666_v26  ;;  %891 = vst [vmem:[#allocation7 + $0x598] sm:$0xff] %v667_v27  ;;  %v669_v35 = vadd.f32 %v445_v32, %v221_v30  ;;  %v670_v36 = vadd.f32 %v446_v34, %v222_v33  ;;  %v223_v37 = vld [vmem:[#allocation2 + $0x5b8] sm:$0xff]  ;;  %v224_v39 = vld [vmem:[#allocation2 + $0x5c0] sm:$0xff] }
  0xab   :  { %v447_v38 = vld [vmem:[#allocation5 + $0x5b8] sm:$0xff]  ;;  %v448_v41 = vld [vmem:[#allocation5 + $0x5c0] sm:$0xff]  ;;  %v225_v42 = vld [vmem:[#allocation2 + $0x5c8] sm:$0xff] }
  0xac   :  { %892 = vst [vmem:[#allocation7 + $0x5a0] sm:$0xff] %v668_v31  ;;  %v671_v40 = vadd.f32 %v447_v38, %v223_v37  ;;  %v449_v43 = vld [vmem:[#allocation5 + $0x5c8] sm:$0xff]  ;;  %893 = vst [vmem:[#allocation7 + $0x5a8] sm:$0xff] %v669_v35  ;;  %v672_v44 = vadd.f32 %v448_v41, %v224_v39  ;;  %v226_v46 = vld [vmem:[#allocation2 + $0x5d0] sm:$0xff] }
  0xad   :  { %894 = vst [vmem:[#allocation7 + $0x5b0] sm:$0xff] %v670_v36  ;;  %v673_v45 = vadd.f32 %v449_v43, %v225_v42  ;;  %v450_v47 = vld [vmem:[#allocation5 + $0x5d0] sm:$0xff]  ;;  %v227_v48 = vld [vmem:[#allocation2 + $0x5d8] sm:$0xff]  ;;  %v228_v51 = vld [vmem:[#allocation2 + $0x5e0] sm:$0xff] }
  0xae   :  { %895 = vst [vmem:[#allocation7 + $0x5b8] sm:$0xff] %v671_v40  ;;  %v674_v49 = vadd.f32 %v450_v47, %v226_v46  ;;  %v451_v50 = vld [vmem:[#allocation5 + $0x5d8] sm:$0xff]  ;;  %v452_v52 = vld [vmem:[#allocation5 + $0x5e0] sm:$0xff]  ;;  %896 = vst [vmem:[#allocation7 + $0x5c0] sm:$0xff] %v672_v44 }
  0xaf   :  { %897 = vst [vmem:[#allocation7 + $0x5c8] sm:$0xff] %v673_v45  ;;  %v675_v53 = vadd.f32 %v451_v50, %v227_v48  ;;  %v676_v54 = vadd.f32 %v452_v52, %v228_v51  ;;  %v229_v55 = vld [vmem:[#allocation2 + $0x5e8] sm:$0xff]  ;;  %v230_v57 = vld [vmem:[#allocation2 + $0x5f0] sm:$0xff]  ;;  %v231_v60 = vld [vmem:[#allocation2 + $0x5f8] sm:$0xff] }
  0xb0   :  { %v453_v56 = vld [vmem:[#allocation5 + $0x5e8] sm:$0xff]  ;;  %898 = vst [vmem:[#allocation7 + $0x5d0] sm:$0xff] %v674_v49  ;;  %v454_v59 = vld [vmem:[#allocation5 + $0x5f0] sm:$0xff]  ;;  %v455_v61 = vld [vmem:[#allocation5 + $0x5f8] sm:$0xff] }
  0xb1   :  { %v677_v58 = vadd.f32 %v453_v56, %v229_v55  ;;  %899 = vst [vmem:[#allocation7 + $0x5d8] sm:$0xff] %v675_v53  ;;  %900 = vst [vmem:[#allocation7 + $0x5e0] sm:$0xff] %v676_v54  ;;  %v678_v62 = vadd.f32 %v454_v59, %v230_v57  ;;  %v679_v63 = vadd.f32 %v455_v61, %v231_v60  ;;  %v232_v0 = vld [vmem:[#allocation2 + $0x600] sm:$0xff]  ;;  %v233_v2 = vld [vmem:[#allocation2 + $0x608] sm:$0xff] }
  0xb2   :  { %v456_v1 = vld [vmem:[#allocation5 + $0x600] sm:$0xff]  ;;  %v457_v4 = vld [vmem:[#allocation5 + $0x608] sm:$0xff]  ;;  %v234_v5 = vld [vmem:[#allocation2 + $0x610] sm:$0xff] }
  0xb3   :  { %901 = vst [vmem:[#allocation7 + $0x5e8] sm:$0xff] %v677_v58  ;;  %v680_v3 = vadd.f32 %v456_v1, %v232_v0  ;;  %v458_v6 = vld [vmem:[#allocation5 + $0x610] sm:$0xff]  ;;  %902 = vst [vmem:[#allocation7 + $0x5f0] sm:$0xff] %v678_v62  ;;  %v681_v7 = vadd.f32 %v457_v4, %v233_v2  ;;  %v235_v9 = vld [vmem:[#allocation2 + $0x618] sm:$0xff] }
  0xb4   :  { %903 = vst [vmem:[#allocation7 + $0x5f8] sm:$0xff] %v679_v63  ;;  %v682_v8 = vadd.f32 %v458_v6, %v234_v5  ;;  %v459_v10 = vld [vmem:[#allocation5 + $0x618] sm:$0xff]  ;;  %v236_v11 = vld [vmem:[#allocation2 + $0x620] sm:$0xff]  ;;  %v237_v14 = vld [vmem:[#allocation2 + $0x628] sm:$0xff] }
  0xb5   :  { %904 = vst [vmem:[#allocation7 + $0x600] sm:$0xff] %v680_v3  ;;  %v683_v12 = vadd.f32 %v459_v10, %v235_v9  ;;  %v460_v13 = vld [vmem:[#allocation5 + $0x620] sm:$0xff]  ;;  %v461_v15 = vld [vmem:[#allocation5 + $0x628] sm:$0xff]  ;;  %905 = vst [vmem:[#allocation7 + $0x608] sm:$0xff] %v681_v7 }
  0xb6   :  { %906 = vst [vmem:[#allocation7 + $0x610] sm:$0xff] %v682_v8  ;;  %v684_v16 = vadd.f32 %v460_v13, %v236_v11  ;;  %v685_v17 = vadd.f32 %v461_v15, %v237_v14  ;;  %v238_v18 = vld [vmem:[#allocation2 + $0x630] sm:$0xff]  ;;  %v239_v20 = vld [vmem:[#allocation2 + $0x638] sm:$0xff]  ;;  %v240_v23 = vld [vmem:[#allocation2 + $0x640] sm:$0xff] }
  0xb7   :  { %v462_v19 = vld [vmem:[#allocation5 + $0x630] sm:$0xff]  ;;  %907 = vst [vmem:[#allocation7 + $0x618] sm:$0xff] %v683_v12  ;;  %v463_v22 = vld [vmem:[#allocation5 + $0x638] sm:$0xff]  ;;  %v464_v24 = vld [vmem:[#allocation5 + $0x640] sm:$0xff] }
  0xb8   :  { %v686_v21 = vadd.f32 %v462_v19, %v238_v18  ;;  %908 = vst [vmem:[#allocation7 + $0x620] sm:$0xff] %v684_v16  ;;  %909 = vst [vmem:[#allocation7 + $0x628] sm:$0xff] %v685_v17  ;;  %v687_v25 = vadd.f32 %v463_v22, %v239_v20  ;;  %v688_v26 = vadd.f32 %v464_v24, %v240_v23  ;;  %v241_v27 = vld [vmem:[#allocation2 + $0x648] sm:$0xff]  ;;  %v242_v29 = vld [vmem:[#allocation2 + $0x650] sm:$0xff] }
  0xb9   :  { %v465_v28 = vld [vmem:[#allocation5 + $0x648] sm:$0xff]  ;;  %v466_v31 = vld [vmem:[#allocation5 + $0x650] sm:$0xff]  ;;  %v243_v32 = vld [vmem:[#allocation2 + $0x658] sm:$0xff] }
  0xba   :  { %910 = vst [vmem:[#allocation7 + $0x630] sm:$0xff] %v686_v21  ;;  %v689_v30 = vadd.f32 %v465_v28, %v241_v27  ;;  %v467_v33 = vld [vmem:[#allocation5 + $0x658] sm:$0xff]  ;;  %911 = vst [vmem:[#allocation7 + $0x638] sm:$0xff] %v687_v25  ;;  %v690_v34 = vadd.f32 %v466_v31, %v242_v29  ;;  %v244_v36 = vld [vmem:[#allocation2 + $0x660] sm:$0xff] }
  0xbb   :  { %912 = vst [vmem:[#allocation7 + $0x640] sm:$0xff] %v688_v26  ;;  %v691_v35 = vadd.f32 %v467_v33, %v243_v32  ;;  %v468_v37 = vld [vmem:[#allocation5 + $0x660] sm:$0xff]  ;;  %v245_v38 = vld [vmem:[#allocation2 + $0x668] sm:$0xff]  ;;  %v246_v41 = vld [vmem:[#allocation2 + $0x670] sm:$0xff] }
  0xbc   :  { %913 = vst [vmem:[#allocation7 + $0x648] sm:$0xff] %v689_v30  ;;  %v692_v39 = vadd.f32 %v468_v37, %v244_v36  ;;  %v469_v40 = vld [vmem:[#allocation5 + $0x668] sm:$0xff]  ;;  %v470_v42 = vld [vmem:[#allocation5 + $0x670] sm:$0xff]  ;;  %914 = vst [vmem:[#allocation7 + $0x650] sm:$0xff] %v690_v34 }
  0xbd   :  { %915 = vst [vmem:[#allocation7 + $0x658] sm:$0xff] %v691_v35  ;;  %v693_v43 = vadd.f32 %v469_v40, %v245_v38  ;;  %v694_v44 = vadd.f32 %v470_v42, %v246_v41  ;;  %v247_v45 = vld [vmem:[#allocation2 + $0x678] sm:$0xff]  ;;  %v248_v47 = vld [vmem:[#allocation2 + $0x680] sm:$0xff]  ;;  %v249_v50 = vld [vmem:[#allocation2 + $0x688] sm:$0xff] }
  0xbe   :  { %v471_v46 = vld [vmem:[#allocation5 + $0x678] sm:$0xff]  ;;  %916 = vst [vmem:[#allocation7 + $0x660] sm:$0xff] %v692_v39  ;;  %v472_v49 = vld [vmem:[#allocation5 + $0x680] sm:$0xff]  ;;  %v473_v51 = vld [vmem:[#allocation5 + $0x688] sm:$0xff] }
  0xbf   :  { %v695_v48 = vadd.f32 %v471_v46, %v247_v45  ;;  %917 = vst [vmem:[#allocation7 + $0x668] sm:$0xff] %v693_v43  ;;  %918 = vst [vmem:[#allocation7 + $0x670] sm:$0xff] %v694_v44  ;;  %v696_v52 = vadd.f32 %v472_v49, %v248_v47  ;;  %v697_v53 = vadd.f32 %v473_v51, %v249_v50  ;;  %v250_v54 = vld [vmem:[#allocation2 + $0x690] sm:$0xff]  ;;  %v251_v56 = vld [vmem:[#allocation2 + $0x698] sm:$0xff] }
  0xc0   :  { %v474_v55 = vld [vmem:[#allocation5 + $0x690] sm:$0xff]  ;;  %v475_v58 = vld [vmem:[#allocation5 + $0x698] sm:$0xff]  ;;  %v252_v59 = vld [vmem:[#allocation2 + $0x6a0] sm:$0xff] }
  0xc1   :  { %919 = vst [vmem:[#allocation7 + $0x678] sm:$0xff] %v695_v48  ;;  %v698_v57 = vadd.f32 %v474_v55, %v250_v54  ;;  %v476_v60 = vld [vmem:[#allocation5 + $0x6a0] sm:$0xff]  ;;  %920 = vst [vmem:[#allocation7 + $0x680] sm:$0xff] %v696_v52  ;;  %v699_v61 = vadd.f32 %v475_v58, %v251_v56  ;;  %v253_v63 = vld [vmem:[#allocation2 + $0x6a8] sm:$0xff] }
  0xc2   :  { %921 = vst [vmem:[#allocation7 + $0x688] sm:$0xff] %v697_v53  ;;  %v700_v62 = vadd.f32 %v476_v60, %v252_v59  ;;  %v477_v0 = vld [vmem:[#allocation5 + $0x6a8] sm:$0xff]  ;;  %v254_v1 = vld [vmem:[#allocation2 + $0x6b0] sm:$0xff]  ;;  %v255_v4 = vld [vmem:[#allocation2 + $0x6b8] sm:$0xff] }
  0xc3   :  { %922 = vst [vmem:[#allocation7 + $0x690] sm:$0xff] %v698_v57  ;;  %v701_v2 = vadd.f32 %v477_v0, %v253_v63  ;;  %v478_v3 = vld [vmem:[#allocation5 + $0x6b0] sm:$0xff]  ;;  %v479_v5 = vld [vmem:[#allocation5 + $0x6b8] sm:$0xff]  ;;  %923 = vst [vmem:[#allocation7 + $0x698] sm:$0xff] %v699_v61 }
  0xc4   :  { %924 = vst [vmem:[#allocation7 + $0x6a0] sm:$0xff] %v700_v62  ;;  %v702_v6 = vadd.f32 %v478_v3, %v254_v1  ;;  %v703_v7 = vadd.f32 %v479_v5, %v255_v4  ;;  %v256_v8 = vld [vmem:[#allocation2 + $0x6c0] sm:$0xff]  ;;  %v257_v10 = vld [vmem:[#allocation2 + $0x6c8] sm:$0xf]  ;;  %v258_v13 = vld [vmem:[#allocation2 + $0x6d0] sm:$0xf] }
  0xc5   :  { %v480_v9 = vld [vmem:[#allocation5 + $0x6c0] sm:$0xff]  ;;  %925 = vst [vmem:[#allocation7 + $0x6a8] sm:$0xff] %v701_v2  ;;  %v481_v12 = vld [vmem:[#allocation5 + $0x6c8] sm:$0xf]  ;;  %v482_v14 = vld [vmem:[#allocation5 + $0x6d0] sm:$0xf] }
  0xc6   :  { %v704_v11 = vadd.f32 %v480_v9, %v256_v8  ;;  %926 = vst [vmem:[#allocation7 + $0x6b0] sm:$0xff] %v702_v6  ;;  %927 = vst [vmem:[#allocation7 + $0x6b8] sm:$0xff] %v703_v7  ;;  %v705_v15 = vadd.f32 %v481_v12, %v257_v10  ;;  %v706_v16 = vadd.f32 %v482_v14, %v258_v13  ;;  %v259_v17 = vld [vmem:[#allocation2 + $0x6d8] sm:$0xf]  ;;  %v260_v19 = vld [vmem:[#allocation2 + $0x6e0] sm:$0xf] }
  0xc7   :  { %v483_v18 = vld [vmem:[#allocation5 + $0x6d8] sm:$0xf]  ;;  %v484_v21 = vld [vmem:[#allocation5 + $0x6e0] sm:$0xf]  ;;  %v261_v22 = vld [vmem:[#allocation2 + $0x6e8] sm:$0xf] }
  0xc8   :  { %928 = vst [vmem:[#allocation7 + $0x6c0] sm:$0xff] %v704_v11  ;;  %v707_v20 = vadd.f32 %v483_v18, %v259_v17  ;;  %v485_v23 = vld [vmem:[#allocation5 + $0x6e8] sm:$0xf]  ;;  %929 = vst [vmem:[#allocation7 + $0x6c8] sm:$0xf] %v705_v15  ;;  %v708_v24 = vadd.f32 %v484_v21, %v260_v19 }
  0xc9   :  { %930 = vst [vmem:[#allocation7 + $0x6d0] sm:$0xf] %v706_v16  ;;  %v709_v25 = vadd.f32 %v485_v23, %v261_v22  ;;  %v262_v26 = vld [vmem:[#allocation2 + $0x6f0] sm:$0xf]  ;;  %v263_v28 = vld [vmem:[#allocation2 + $0x6f8] sm:$0xf] }
  0xca   :  { %v486_v27 = vld [vmem:[#allocation5 + $0x6f0] sm:$0xf]  ;;  %931 = vst [vmem:[#allocation7 + $0x6d8] sm:$0xf] %v707_v20  ;;  %v487_v30 = vld [vmem:[#allocation5 + $0x6f8] sm:$0xf] }
  0xcb   :  { %v710_v29 = vadd.f32 %v486_v27, %v262_v26  ;;  %932 = vst [vmem:[#allocation7 + $0x6e0] sm:$0xf] %v708_v24  ;;  %933 = vst [vmem:[#allocation7 + $0x6e8] sm:$0xf] %v709_v25  ;;  %v711_v31 = vadd.f32 %v487_v30, %v263_v28 }
  0xcd   :  { %934 = vst [vmem:[#allocation7 + $0x6f0] sm:$0xf] %v710_v29  ;;  %935 = vst [vmem:[#allocation7 + $0x6f8] sm:$0xf] %v711_v31 }
  0xce   :  { %1010 = shalt.err (!%p1007_p0)
}
  0xcf   :  { %947 = dma.vmem_to_hbm [thread:$0]  %s942_s1, 28672, %s1068_s2, [#allocation4], %s1026_s12, %s1026_s12, %s1027_s13  }
  0xd0   :  { %1023 = dma.done.wait [#allocation4], 28672  }
  0xd1   :  { %1024 = vsyncadd [#allocation4], 4294938624 }
  0xd2   :  { %951 = vsyncpa [#allocation3], 1 }
  0xd3   :  { %952 = vsyncpa [#allocation6], 1 }
  0xd4   :  { %953 = vsyncpa [#allocation4], 1 }

</bundles_post_ra>
